<compile_context>
chip_gen: v5e
topology: v5e:2x2
jax: 0.10.0
libtpu: 0.0.40
codegen_flags: <defaults>
</compile_context>

<pallas_src>
import math
import functools

import jax
import jax.numpy as jnp
from jax.experimental import pallas as pl
from jax.experimental.pallas import tpu as pltpu

_INV_SQRT2 = 0.7071067811865476


def _round_up(n, m):
    return ((n + m - 1) // m) * m


@functools.lru_cache(maxsize=1)
def _device_kind():
    try:
        return jax.devices()[0].device_kind.lower()
    except Exception:
        return ""


@functools.lru_cache(maxsize=1)
def _bf16_elementwise_ok():
    # Native bf16 VPU exists on v6e and later; v5e (and older) emulate bf16
    # elementwise so we keep f32 there (v5e is MXU-bound for this kernel).
    kind = _device_kind()
    return any(tag in kind for tag in ("v6", "v7", "tpu7"))


@functools.lru_cache(maxsize=1)
def _vmem_budget_bytes():
    # ~80% of per-core VMEM: ~51 MiB on v7x (64 MiB physical), ~102 MiB on
    # v5e/v6e (128 MiB physical).  Leaves headroom for compiler scratch.
    cap = None
    try:
        cap = int(pltpu.get_tpu_info().vmem_capacity_bytes)
    except Exception:
        cap = None
    if not cap:
        kind = _device_kind()
        cap = (64 if ("v7" in kind or "tpu7" in kind) else 128) * 2**20
    return int(0.80 * cap)


def _head_kernel(x_ref, w1_ref, b1_ref, g_ref, beta_ref, w2_ref, b2_ref, o_ref,
                 *, ew_dtype):
    # x_ref: (TR, H) row tile; weights are bf16 and resident for every grid
    # step (constant index_map).  Matmul accumulation and LN statistics in f32.
    x = x_ref[...].astype(jnp.bfloat16)

    # proj1: (TR, H) @ (H, 2H) -> f32, + bias (f32)
    h = jnp.dot(x, w1_ref[...], preferred_element_type=jnp.float32)
    h = h + b1_ref[...]

    # LayerNorm statistics over last dim (eps = 1e-5, nn.LayerNorm default).
    # One-pass variance: mean(h*h) - mean^2, kept in f32 (cancellation-safe
    # enough for LN-scale activations).
    mean = jnp.mean(h, axis=-1, keepdims=True)
    mean_sq = jnp.mean(h * h, axis=-1, keepdims=True)
    var = mean_sq - mean * mean
    inv = jax.lax.rsqrt(var + 1e-5)

    # Post-reduction elementwise in ew_dtype (bf16 on v6e/v7x, f32 on v5e).
    hn = ((h - mean) * inv).astype(ew_dtype)
    hn = hn * g_ref[...].astype(ew_dtype) + beta_ref[...].astype(ew_dtype)

    # GELU (exact, erf-based — PyTorch nn.GELU default).  The erf polynomial
    # stays f32 (safe Mosaic lowering on all generations); the gating multiply
    # runs in ew_dtype.
    erf_t = jax.lax.erf(hn.astype(jnp.float32) * _INV_SQRT2)
    gate = (0.5 * (1.0 + erf_t)).astype(ew_dtype)
    act = (hn * gate).astype(jnp.bfloat16)

    # proj2: (TR, 2H) @ (2H, Cpad) -> f32, + bias (f32)
    out = jnp.dot(act, w2_ref[...], preferred_element_type=jnp.float32)
    out = out + b2_ref[...]
    o_ref[...] = out.astype(o_ref.dtype)


@functools.partial(jax.jit, static_argnames=("row_tile",))
def multilabel_head_pallas(x2d, w1, b1, gamma, beta, w2, b2, *, row_tile=512):
    rows, hidden = x2d.shape
    hidden2 = w1.shape[1]
    num_classes = w2.shape[1]

    ew_dtype = jnp.bfloat16 if _bf16_elementwise_ok() else jnp.float32
    vmem_budget = _vmem_budget_bytes()

    # Lane-dense padded class dim: 256-wide N tiles when the head is large
    # (fills the 256-wide MXU on v6e/v7x), 128 for small heads.
    lane_mult = 256 if num_classes > 128 else 128
    c_pad = _round_up(num_classes, lane_mult)

    x_isz = jnp.dtype(x2d.dtype).itemsize
    o_isz = x_isz

    # Row tile: large (default 512) to amortize per-grid-step overhead and feed
    # the MXU big LHS slabs, but capped so the grid keeps >= 2 steps (both v7x
    # TensorCores stay busy) and stays a multiple of 8 sublanes.
    rt = min(row_tile, max(8, _round_up(rows, 16) // 2))

    def _est_vmem(rt_):
        return (2 * rt_ * hidden * x_isz            # x tiles (double-buffered)
                + 2 * hidden * hidden2 * 2          # w1 bf16
                + 2 * hidden2 * c_pad * 2           # w2 bf16
                + 2 * (3 * hidden2 + c_pad) * 4     # b1, gamma, beta, b2
                + 2 * rt_ * c_pad * o_isz           # out tiles
                + 4 * rt_ * hidden2 * 4)            # f32/bf16 intermediates

    while rt > 8 and _est_vmem(rt) > int(0.85 * vmem_budget):
        rt = max(8, _round_up(rt // 2, 8))

    rows_p = _round_up(rows, rt)
    grid = (rows_p // rt,)

    # bf16 weights feed the MXU; biases / LN params stay f32.
    w1b = w1.astype(jnp.bfloat16)
    w2b = w2.astype(jnp.bfloat16)
    b1f = b1.reshape(1, hidden2).astype(jnp.float32)
    gammaf = gamma.reshape(1, hidden2).astype(jnp.float32)
    betaf = beta.reshape(1, hidden2).astype(jnp.float32)
    b2f = b2.reshape(1, num_classes).astype(jnp.float32)

    if c_pad != num_classes:
        w2b = jnp.pad(w2b, ((0, 0), (0, c_pad - num_classes)))
        b2f = jnp.pad(b2f, ((0, 0), (0, c_pad - num_classes)))
    x2d_in = jnp.pad(x2d, ((0, rows_p - rows), (0, 0))) if rows_p != rows else x2d

    cost = pl.CostEstimate(
        flops=int(2 * rows_p * (hidden * hidden2 + hidden2 * c_pad)),
        transcendentals=int(rows_p * (hidden2 + 1)),   # erf per elem + rsqrt/row
        bytes_accessed=int(rows_p * hidden * x_isz
                           + hidden * hidden2 * 2
                           + hidden2 * c_pad * 2
                           + (3 * hidden2 + c_pad) * 4
                           + rows_p * c_pad * o_isz),
    )

    vmem_limit = int(min(max(2 * _est_vmem(rt), 32 * 2**20), vmem_budget))

    kernel = functools.partial(_head_kernel, ew_dtype=ew_dtype)

    out_p = pl.pallas_call(
        kernel,
        out_shape=jax.ShapeDtypeStruct((rows_p, c_pad), x2d.dtype),
        grid_spec=pltpu.PrefetchScalarGridSpec(
            num_scalar_prefetch=0,
            grid=grid,
            in_specs=[
                pl.BlockSpec((rt, hidden), lambda i: (i, 0)),        # x tile
                pl.BlockSpec((hidden, hidden2), lambda i: (0, 0)),   # w1 (resident)
                pl.BlockSpec((1, hidden2), lambda i: (0, 0)),        # b1
                pl.BlockSpec((1, hidden2), lambda i: (0, 0)),        # gamma
                pl.BlockSpec((1, hidden2), lambda i: (0, 0)),        # beta
                pl.BlockSpec((hidden2, c_pad), lambda i: (0, 0)),    # w2 (resident)
                pl.BlockSpec((1, c_pad), lambda i: (0, 0)),          # b2
            ],
            out_specs=pl.BlockSpec((rt, c_pad), lambda i: (i, 0)),
        ),
        compiler_params=pltpu.CompilerParams(
            dimension_semantics=("parallel",),       # rows shard across v7x cores
            vmem_limit_bytes=vmem_limit,
        ),
        cost_estimate=cost,
    )(x2d_in, w1b, b1f, gammaf, betaf, w2b, b2f)

    return out_p[:rows, :num_classes]


def reference_head(x2d, w1, b1, gamma, beta, w2, b2):
    h = x2d @ w1 + b1
    mean = jnp.mean(h, axis=-1, keepdims=True)
    var = jnp.mean((h - mean) ** 2, axis=-1, keepdims=True)
    h = (h - mean) / jnp.sqrt(var + 1e-5)
    h = h * gamma + beta
    h = 0.5 * h * (1.0 + jax.lax.erf(h / math.sqrt(2.0)))
    return h @ w2 + b2


if __name__ == "__main__":
    # Small shapes consistent with the module's forward (Linear over last dim).
    batch, seq, hidden = 2, 8, 32
    num_classes = 16
    hidden2 = hidden * 2

    key = jax.random.PRNGKey(0)
    kx, kw1, kb1, kw2, kb2 = jax.random.split(key, 5)

    x = jax.random.normal(kx, (batch, seq, hidden), dtype=jnp.float32)

    # Deterministic parameter init (uniform +/-1/sqrt(fan_in), PyTorch-Linear-like).
    lim1 = 1.0 / math.sqrt(hidden)
    w1 = jax.random.uniform(kw1, (hidden, hidden2), jnp.float32, -lim1, lim1)
    b1 = jax.random.uniform(kb1, (1, hidden2), jnp.float32, -lim1, lim1)
    gamma = jnp.ones((1, hidden2), jnp.float32)   # LayerNorm weight init = 1
    beta = jnp.zeros((1, hidden2), jnp.float32)   # LayerNorm bias init = 0
    lim2 = 1.0 / math.sqrt(hidden2)
    w2 = jax.random.uniform(kw2, (hidden2, num_classes), jnp.float32, -lim2, lim2)
    b2 = jax.random.uniform(kb2, (1, num_classes), jnp.float32, -lim2, lim2)

    x2d = x.reshape(batch * seq, hidden)

    out2d = multilabel_head_pallas(x2d, w1, b1, gamma, beta, w2, b2)
    out = out2d.reshape(batch, seq, num_classes)
    out = jax.block_until_ready(out)

    ref = reference_head(x2d, w1, b1, gamma, beta, w2, b2).reshape(
        batch, seq, num_classes
    )
    assert out.shape == (batch, seq, num_classes)
    # bf16 MXU operands (+ bf16 post-LN elementwise on v6e/v7x) with f32
    # accumulation and f32 LN statistics -> ~1e-2 level drift vs f32 reference.
    assert jnp.allclose(out, ref, atol=5e-2, rtol=5e-2), (
        float(jnp.max(jnp.abs(out - ref)))
    )
    print("KERNEL_OK")
</pallas_src>

<mosaic_0001>
module attributes {stable_mosaic.version = 11 : i64} {
  func.func @_head_kernel(%arg0: i32, %arg1: memref<8x32xf32, #tpu.memory_space<vmem>>, %arg2: memref<32x64xbf16, #tpu.memory_space<vmem>>, %arg3: memref<1x64xf32, #tpu.memory_space<vmem>>, %arg4: memref<1x64xf32, #tpu.memory_space<vmem>>, %arg5: memref<1x64xf32, #tpu.memory_space<vmem>>, %arg6: memref<64x128xbf16, #tpu.memory_space<vmem>>, %arg7: memref<1x128xf32, #tpu.memory_space<vmem>>, %arg8: memref<8x128xf32, #tpu.memory_space<vmem>>) attributes {dimension_semantics = [#tpu.dimension_semantics<parallel>], iteration_bounds = array<i64: 2>, scalar_prefetch = 0 : i64, scratch_operands = 0 : i64, tpu.core_type = #tpu.core_type<tc>, window_params = [{transform_indices = @transform_0, window_bounds = array<i64: 8, 32>}, {pipeline_mode = #tpu.pipeline_mode<synchronous>, transform_indices = @transform_1, window_bounds = array<i64: 32, 64>}, {pipeline_mode = #tpu.pipeline_mode<synchronous>, transform_indices = @transform_2, window_bounds = array<i64: 1, 64>}, {pipeline_mode = #tpu.pipeline_mode<synchronous>, transform_indices = @transform_3, window_bounds = array<i64: 1, 64>}, {pipeline_mode = #tpu.pipeline_mode<synchronous>, transform_indices = @transform_4, window_bounds = array<i64: 1, 64>}, {pipeline_mode = #tpu.pipeline_mode<synchronous>, transform_indices = @transform_5, window_bounds = array<i64: 64, 128>}, {pipeline_mode = #tpu.pipeline_mode<synchronous>, transform_indices = @transform_6, window_bounds = array<i64: 1, 128>}, {transform_indices = @transform_7, window_bounds = array<i64: 8, 128>}]} {
    %c0 = arith.constant 0 : index
    %c0_0 = arith.constant 0 : index
    %0 = vector.load %arg1[%c0, %c0_0] : memref<8x32xf32, #tpu.memory_space<vmem>>, vector<8x32xf32>
    %1 = arith.truncf %0 : vector<8x32xf32> to vector<8x32xbf16>
    %c0_1 = arith.constant 0 : index
    %c0_2 = arith.constant 0 : index
    %2 = vector.load %arg2[%c0_1, %c0_2] : memref<32x64xbf16, #tpu.memory_space<vmem>>, vector<32x64xbf16>
    %cst = arith.constant dense<0.000000e+00> : vector<8x64xf32>
    %3 = tpu.matmul %1, %2, %cst {dimension_numbers = #tpu.dot_dimension_numbers<[1], [0], [0], [1], [0, 0, 1, 1], [], []>} : vector<8x32xbf16>, vector<32x64xbf16>, vector<8x64xf32> -> vector<8x64xf32>
    %c0_3 = arith.constant 0 : index
    %c0_4 = arith.constant 0 : index
    %4 = vector.load %arg3[%c0_3, %c0_4] : memref<1x64xf32, #tpu.memory_space<vmem>>, vector<1x64xf32>
    %5 = vector.broadcast %4 : vector<1x64xf32> to vector<8x64xf32>
    %6 = arith.addf %3, %5 : vector<8x64xf32>
    %cst_5 = arith.constant dense<0.000000e+00> : vector<8xf32>
    %7 = vector.multi_reduction <add>, %6, %cst_5 [1] : vector<8x64xf32> to vector<8xf32>
    %8 = vector.shape_cast %7 : vector<8xf32> to vector<8x1xf32>
    %cst_6 = arith.constant 6.400000e+01 : f32
    %9 = vector.broadcast %cst_6 : f32 to vector<8x1xf32>
    %10 = arith.divf %8, %9 : vector<8x1xf32>
    %11 = arith.mulf %6, %6 : vector<8x64xf32>
    %cst_7 = arith.constant dense<0.000000e+00> : vector<8xf32>
    %12 = vector.multi_reduction <add>, %11, %cst_7 [1] : vector<8x64xf32> to vector<8xf32>
    %13 = vector.shape_cast %12 : vector<8xf32> to vector<8x1xf32>
    %cst_8 = arith.constant 6.400000e+01 : f32
    %14 = vector.broadcast %cst_8 : f32 to vector<8x1xf32>
    %15 = arith.divf %13, %14 : vector<8x1xf32>
    %16 = arith.mulf %10, %10 : vector<8x1xf32>
    %17 = arith.subf %15, %16 : vector<8x1xf32>
    %cst_9 = arith.constant 9.99999974E-6 : f32
    %18 = vector.broadcast %cst_9 : f32 to vector<8x1xf32>
    %19 = arith.addf %17, %18 : vector<8x1xf32>
    %20 = math.rsqrt %19 : vector<8x1xf32>
    %21 = vector.broadcast %10 : vector<8x1xf32> to vector<8x64xf32>
    %22 = arith.subf %6, %21 : vector<8x64xf32>
    %23 = vector.broadcast %20 : vector<8x1xf32> to vector<8x64xf32>
    %24 = arith.mulf %22, %23 : vector<8x64xf32>
    %c0_10 = arith.constant 0 : index
    %c0_11 = arith.constant 0 : index
    %25 = vector.load %arg4[%c0_10, %c0_11] : memref<1x64xf32, #tpu.memory_space<vmem>>, vector<1x64xf32>
    %26 = vector.broadcast %25 : vector<1x64xf32> to vector<8x64xf32>
    %27 = arith.mulf %24, %26 : vector<8x64xf32>
    %c0_12 = arith.constant 0 : index
    %c0_13 = arith.constant 0 : index
    %28 = vector.load %arg5[%c0_12, %c0_13] : memref<1x64xf32, #tpu.memory_space<vmem>>, vector<1x64xf32>
    %29 = vector.broadcast %28 : vector<1x64xf32> to vector<8x64xf32>
    %30 = arith.addf %27, %29 : vector<8x64xf32>
    %cst_14 = arith.constant 0.707106769 : f32
    %31 = vector.broadcast %cst_14 : f32 to vector<8x64xf32>
    %32 = arith.mulf %30, %31 : vector<8x64xf32>
    %33 = math.erf %32 : vector<8x64xf32>
    %cst_15 = arith.constant 1.000000e+00 : f32
    %34 = vector.broadcast %cst_15 : f32 to vector<8x64xf32>
    %35 = arith.addf %34, %33 : vector<8x64xf32>
    %cst_16 = arith.constant 5.000000e-01 : f32
    %36 = vector.broadcast %cst_16 : f32 to vector<8x64xf32>
    %37 = arith.mulf %36, %35 : vector<8x64xf32>
    %38 = arith.mulf %30, %37 : vector<8x64xf32>
    %39 = arith.truncf %38 : vector<8x64xf32> to vector<8x64xbf16>
    %c0_17 = arith.constant 0 : index
    %c0_18 = arith.constant 0 : index
    %40 = vector.load %arg6[%c0_17, %c0_18] : memref<64x128xbf16, #tpu.memory_space<vmem>>, vector<64x128xbf16>
    %cst_19 = arith.constant dense<0.000000e+00> : vector<8x128xf32>
    %41 = tpu.matmul %39, %40, %cst_19 {dimension_numbers = #tpu.dot_dimension_numbers<[1], [0], [0], [1], [0, 0, 1, 1], [], []>} : vector<8x64xbf16>, vector<64x128xbf16>, vector<8x128xf32> -> vector<8x128xf32>
    %c0_20 = arith.constant 0 : index
    %c0_21 = arith.constant 0 : index
    %42 = vector.load %arg7[%c0_20, %c0_21] : memref<1x128xf32, #tpu.memory_space<vmem>>, vector<1x128xf32>
    %43 = vector.broadcast %42 : vector<1x128xf32> to vector<8x128xf32>
    %44 = arith.addf %41, %43 : vector<8x128xf32>
    %c0_22 = arith.constant 0 : index
    %c0_23 = arith.constant 0 : index
    %45 = vector.load %arg8[%c0_22, %c0_23] : memref<8x128xf32, #tpu.memory_space<vmem>>, vector<8x128xf32>
    tpu.vector_store %arg8[%c0_22, %c0_23], %44 {strides = array<i32>} : memref<8x128xf32, #tpu.memory_space<vmem>>, vector<8x128xf32>,
    return
  }
  func.func @transform_0(%arg0: i32) -> (i32, i32) {
    %c0_i32 = arith.constant 0 : i32
    %c0_i32_0 = arith.constant 0 : i32
    return %arg0, %c0_i32 : i32, i32
  }
  func.func @transform_1(%arg0: i32) -> (i32, i32) {
    %c0_i32 = arith.constant 0 : i32
    %c0_i32_0 = arith.constant 0 : i32
    %c0_i32_1 = arith.constant 0 : i32
    return %c0_i32, %c0_i32_0 : i32, i32
  }
  func.func @transform_2(%arg0: i32) -> (i32, i32) {
    %c0_i32 = arith.constant 0 : i32
    %c0_i32_0 = arith.constant 0 : i32
    %c0_i32_1 = arith.constant 0 : i32
    return %c0_i32, %c0_i32_0 : i32, i32
  }
  func.func @transform_3(%arg0: i32) -> (i32, i32) {
    %c0_i32 = arith.constant 0 : i32
    %c0_i32_0 = arith.constant 0 : i32
    %c0_i32_1 = arith.constant 0 : i32
    return %c0_i32, %c0_i32_0 : i32, i32
  }
  func.func @transform_4(%arg0: i32) -> (i32, i32) {
    %c0_i32 = arith.constant 0 : i32
    %c0_i32_0 = arith.constant 0 : i32
    %c0_i32_1 = arith.constant 0 : i32
    return %c0_i32, %c0_i32_0 : i32, i32
  }
  func.func @transform_5(%arg0: i32) -> (i32, i32) {
    %c0_i32 = arith.constant 0 : i32
    %c0_i32_0 = arith.constant 0 : i32
    %c0_i32_1 = arith.constant 0 : i32
    return %c0_i32, %c0_i32_0 : i32, i32
  }
  func.func @transform_6(%arg0: i32) -> (i32, i32) {
    %c0_i32 = arith.constant 0 : i32
    %c0_i32_0 = arith.constant 0 : i32
    %c0_i32_1 = arith.constant 0 : i32
    return %c0_i32, %c0_i32_0 : i32, i32
  }
  func.func @transform_7(%arg0: i32) -> (i32, i32) {
    %c0_i32 = arith.constant 0 : i32
    %c0_i32_0 = arith.constant 0 : i32
    return %arg0, %c0_i32 : i32, i32
  }
}

</mosaic_0001>

<bundles_post_ra>
// kernel: multilabel_head_pallas.1
= control target key start
LH: loop header
LB: loop body
LE: loop exit
PB: predicated region body
PF: predicated region fallthrough
CT: control target
= control target key end

     0   :  { %12 = vsyncpa [#allocation3], 0  ;;  %s845_s0 = inlined_call_operand.vmem [shape: f32[16,32], index: 0, kind: input, shape index: {}]   ;;  %s846_s1 = inlined_call_operand.vmem [shape: bf16[32,64], index: 1, kind: input, shape index: {}]   ;;  %s847_s2 = inlined_call_operand.vmem [shape: f32[1,64], index: 2, kind: input, shape index: {}]   ;;  %s848_s3 = inlined_call_operand.vmem [shape: f32[1,64], index: 3, kind: input, shape index: {}]   ;;  %s849_s4 = inlined_call_operand.vmem [shape: f32[1,64], index: 4, kind: input, shape index: {}]   ;;  %s850_s5 = inlined_call_operand.vmem [shape: bf16[64,128], index: 5, kind: input, shape index: {}]   ;;  %s851_s6 = inlined_call_operand.vmem [shape: f32[1,128], index: 6, kind: input, shape index: {}]   ;;  %s852_s7 = inlined_call_operand.hbm [shape: f32[16,128], index: 7, kind: output, shape index: {}]  }
   0x1   :  { %14 = vsyncpa [#allocation3 + $0x1], 0  ;;  %s727_s24 = smov 0   ;;  %s729_s25 = smov 0  }
   0x2   :  { %s731_s26 = smov 0   ;;  %s733_s27 = smov 0  }
   0x3 LB: > { %s748_s28 = sadd.s32 4294967295, %s684_s27   ;;  %s529_s29 = sadd.s32 4294967294, %s684_s27   ;;  %s684_s27 = sphi %s733_s27, %s858_s27   ;;  %s680_s26 = sphi %s731_s26, %s857_s26   ;;  %s676_s25 = sphi %s729_s25, %s856_s25   ;;  %s672_s24 = sphi %s727_s24, %s855_s24  }
   0x4   : > { %s752_s30 = sadd.s32 1, %s684_s27   ;;  %s179_s8 = sadd.s32 1, %s680_s26 }
   0x5   : > { %s176_s9 = ssub.s32 %s684_s27, %s752_s30  ;;  %p189_p0 = scmp.ne.s32.totalorder %s680_s26, %s676_s25 }
   0x6   : > { %p177_p1 = scmp.eq.s32.totalorder %s176_s9, 0  ;;  %p190_p2 = scmp.eq.s32.totalorder %s748_s28, 1 }
   0x7   : > { %p195_p3 = scmp.ne.s32.totalorder %s676_s25, %s672_s24  ;;  %p196_p4 = scmp.eq.s32.totalorder %s529_s29, 1 }
   0x8   : > { %s763_s10 = scalar_select %p177_p1, %s680_s26, %s179_s8  }
   0x9   : > { %p765_p5 = por %p190_p2, %p189_p0  ;;  %p769_p6 = por %p196_p4, %p195_p3 }
   0xa   : > { %p532_p7 = scmp.ge.s32.totalorder %s684_s27, 1  ;;  %p239_p8 = scmp.lt.s32.totalorder %s684_s27, 3 }
   0xc   : > { %p240_p9 = pnand %p532_p7, %p239_p8 }
   0xd   : > { %p270_p10 = scmp.lt.s32.totalorder (!%p240_p9), %s748_s28, 1  ;;  %s267_s22 = sand.u32 (!%p240_p9), 1, %s676_s25  }
   0xe   : > { %243 = sbr.rel (%p240_p9) target bundleno = 499 (0x1f3), region = 48  ;;  %s563_s23 = sshll.u32 (!%p240_p9), %s748_s28, 3 }
   0xf   : > { %s533_s29 = sshll.u32 (!%p240_p9), %s267_s22, 3  ;;  %s465_s13 = scalar_lea.hbm (!%p240_p9), %s852_s7, %s563_s23 }
  0x10   : > { %s269_s16 = scalar_lea.vmem (!%p240_p9), [#allocation2], %s533_s29  ;;  %s455_s19 = scalar_lea.sflag (!%p240_p9), [#allocation3], %s267_s22 }
  0x11   : > { %s642_s8 = scalar_lea.hbm (!%p240_p9), %s852_s7, 16 }
  0x13   : > { %v567_v0 = vld [vmem:[%s846_s1 + $0x8] sm:$0xff]  ;;  %v566_v1 = vld [vmem:[%s846_s1] sm:$0xff]  ;;  %s271_s17 = scalar_select %p270_p10, %s748_s28, 1  ;;  %vm297_vm0 = vcmask 261120   ;;  %vm314_vm1 = vcmask 523264   ;;  %v686_v11 = vmov 64.0  }
  0x14   : > { %307 = vmatpush.bf16.msra.mxu0 %v567_v0  ;;  %v612_v4 = vld [vmem:[%s847_s2] ss:$0 sm:$0xff]  ;;  %616 = vrcp.f32 %v686_v11  ;;  %v571_v18 = vld [vmem:[%s850_s5 + $0x18] sm:$0xff]  ;;  %v570_v20 = vld [vmem:[%s850_s5 + $0x10] sm:$0xff] }
  0x15   : > { %s534_s18 = sshll.u32 %s271_s17, 3  ;;  %444 = vmatpush.bf16.msra.mxu1 %v571_v18  ;;  %v569_v22 = vld [vmem:[%s850_s5 + $0x8] sm:$0xff]  ;;  %v568_v26 = vld [vmem:[%s850_s5] sm:$0xff]  ;;  %s467_s17 = sshll.u32 %s269_s16, 4  ;;  %s468_s17 = int_to_ptr.vmem [resolvable:$true] %s467_s17 }
  0x16   : > { %s273_s21 = scalar_lea.vmem %s845_s0, %s534_s18  ;;  %v613_v36 = vld [vmem:[%s848_s3] ss:$0 sm:$0xff]  ;;  %s469_s18 = sshll.u32 %s465_s13, 4  ;;  %s470_s18 = int_to_ptr.hbm [resolvable:$true] %s469_s18 }
  0x17   : > { %v275_v2 = vld [vmem:[%s273_s21] sm:$0xff]  ;;  %s636_s28 = sshra.s32 %s470_s18, 4  ;;  %s637_s28 = int_to_ptr.hbm [resolvable:$true] %s636_s28 }
  0x18   : > { %308 = vmatpush.bf16.msra.mxu0 %v566_v1  ;;  %v276_v3 = vpack.c.bf16 %v275_v2, %v275_v2  ;;  %v614_v39 = vld [vmem:[%s849_s4] ss:$0 sm:$0xff]  ;;  %s638_s20 = scalar_lea.hbm %s637_s28, 8  ;;  %p643_p0 = scmp.lt.s32.totalorder %s637_s28, %s852_s7 }
  0x19   : > { %445 = vmatpush.bf16.msra.mxu1 %v570_v20  ;;  %v615_v18 = vld [vmem:[%s851_s6] ss:$0 sm:$0xff]  ;;  %p639_p11 = scmp.ne.s32.totalorder %s637_s28, %s638_s20  ;;  %p644_p1 = scmp.lt.s32.totalorder %s642_s8, %s638_s20 }
  0x1a   : > { %v617_v12 = vpop.eup %616 }
  0x1b   : > { %543 = vmatmul.msk.bf16.vlgmr.msra.gmra.mxu0 %vm297_vm0, %v276_v3  ;;  %v319_v13 = vmul.f32 64.0, %v617_v12  ;;  %vm323_vm2 = vweird.f32 %v617_v12  ;;  %p640_p12 = pnand %p639_p11, %p765_p5  ;;  %p645_p2 = por %p644_p1, %p643_p0 }
  0x1d   : > { %v320_v14 = vsub.f32 1.0, %v319_v13  ;;  %446 = vmatpush.bf16.msra.mxu1 %v569_v22  ;;  %p641_p13 = pneg %p640_p12 }
  0x1f   : > { %v321_v15 = vmul.f32 %v617_v12, %v320_v14  ;;  %p646_p3 = pnand %p645_p2, %p641_p13 }
  0x21   : > { %v322_v16 = vadd.f32 %v617_v12, %v321_v15  ;;  %447 = vmatpush.bf16.msra.mxu1 %v568_v26 }
  0x23   : > { %v324_v19 = vsel %vm323_vm2, %v617_v12, %v322_v16 }
  0x98   : > { %v310_v5 = vpop.f32.mrf.mxu0 }
  0x99   : > { %v311_v6 = vadd.f32 %v612_v4, %v310_v5 }
  0x9b   : > { %v315_v7 = vsel %vm314_vm1, %v311_v6, 0.0  ;;  %v326_v8 = vmul.f32 %v311_v6, %v311_v6 }
  0x9c   : > { %316 = vadd.xlane.f32.xlu0 %v315_v7 }
  0x9d   : > { %v327_v10 = vsel %vm314_vm1, %v326_v8, 0.0 }
  0xa0   : > { %v312_v9 = vpop.f32.mrf.mxu0 }
  0xa4   : > { %328 = vadd.xlane.f32.xlu0 %v327_v10 }
 0x10f   : > { %v317_v17 = vpop.xlane.xlu0 %316 }
 0x110   : > { %v325_v21 = vmul.f32 %v324_v19, %v317_v17 }
 0x112   : > { %v331_v24 = vmul.f32 %v325_v21, %v325_v21  ;;  %v344_v35 = vsub.f32 %v311_v6, %v325_v21 }
 0x117   : > { %v329_v23 = vpop.xlane.xlu0 %328 }
 0x118   : > { %v330_v25 = vmul.f32 %v329_v23, %v324_v19 }
 0x11a   : > { %v332_v27 = vsub.f32 %v330_v25, %v331_v24 }
 0x11c   : > { %v333_v28 = vadd.f32 1e-05, %v332_v27 }
 0x11e   : > { %618 = vrsqrt.f32 %v333_v28  ;;  %vm340_vm4 = vweird.f32 %v333_v28 }
 0x124   : > { %v619_v29 = vpop.eup %618 }
 0x125   : > { %v335_v30 = vmul.f32 %v619_v29, %v333_v28  ;;  %vm341_vm3 = vweird.f32 %v619_v29 }
 0x126   : > { %vm342_vm5 = vmor %vm340_vm4, %vm341_vm3 }
 0x127   : > { %v336_v31 = vmul.f32 %v619_v29, %v335_v30 }
 0x129   : > { %v337_v32 = vmul.f32 0.5, %v336_v31 }
 0x12b   : > { %v338_v33 = vsub.f32 1.5, %v337_v32 }
 0x12d   : > { %v339_v34 = vmul.f32 %v619_v29, %v338_v33 }
 0x12f   : > { %v343_v37 = vsel %vm342_vm5, %v619_v29, %v339_v34 }
 0x130   : > { %v345_v38 = vmul.f32 %v344_v35, %v343_v37 }
 0x132   : > { %v350_v40 = vmul.f32 %v613_v36, %v345_v38 }
 0x134   : > { %v355_v41 = vadd.f32 %v614_v39, %v350_v40 }
 0x136   : > { %v356_v42 = vmul.f32 0.70710677, %v355_v41 }
 0x138   : > { %v357_v43 = vmul.f32 %v356_v42, %v356_v42 }
 0x13a   : > { %v358_v44 = vmin.f32 %v357_v43, 16.0 }
 0x13c   : > { %v359_v45 = vmul.f32 2.1237322e-06, %v358_v44  ;;  %v370_v46 = vmul.f32 3.8918573e-05, %v358_v44 }
 0x13e   : > { %v360_v47 = vadd.f32 0.00028619796, %v359_v45  ;;  %v371_v48 = vadd.f32 0.001143296, %v370_v46 }
 0x140   : > { %v361_v49 = vmul.f32 %v360_v47, %v358_v44  ;;  %v372_v50 = vmul.f32 %v371_v48, %v358_v44 }
 0x142   : > { %v373_v51 = vadd.f32 0.014752088, %v372_v50  ;;  %v362_v52 = vadd.f32 0.0036580483, %v361_v49 }
 0x144   : > { %v374_v53 = vmul.f32 %v373_v51, %v358_v44  ;;  %v363_v55 = vmul.f32 %v362_v52, %v358_v44 }
 0x146   : > { %v375_v54 = vadd.f32 0.112945676, %v374_v53  ;;  %v364_v58 = vadd.f32 0.05243302, %v363_v55 }
 0x148   : > { %v376_v56 = vmul.f32 %v375_v54, %v358_v44  ;;  %v365_v61 = vmul.f32 %v364_v58, %v358_v44 }
 0x14a   : > { %v377_v57 = vadd.f32 0.4994258, %v376_v56  ;;  %v366_v62 = vadd.f32 0.18741608, %v365_v61 }
 0x14c   : > { %v378_v59 = vmul.f32 %v377_v57, %v358_v44  ;;  %v367_v0 = vmul.f32 %v366_v62, %v358_v44 }
 0x14e   : > { %v379_v60 = vadd.f32 1.0, %v378_v59  ;;  %v368_v4 = vadd.f32 1.1283791, %v367_v0 }
 0x150   : > { %620 = vrcp.f32 %v379_v60  ;;  %v391_v3 = vand.u32 2147483648, %v379_v60  ;;  %v389_v6 = vand.u32 2147483647, %v379_v60  ;;  %vm385_vm7 = vweird.f32 %v379_v60 }
 0x151   : > { %v369_v9 = vmul.f32 %v368_v4, %v356_v42 }
 0x152   : > { %v392_v8 = vor.u32 1.1754944e-38, %v391_v3  ;;  %vm390_vm9 = vcmp.eq.f32.partialorder %v389_v6, 8.507059e+37 }
 0x156   : > { %v621_v63 = vpop.eup %620 }
 0x157   : > { %v381_v1 = vmul.f32 %v621_v63, %v379_v60  ;;  %vm386_vm6 = vweird.f32 %v621_v63 }
 0x158   : > { %vm387_vm8 = vmor %vm385_vm7, %vm386_vm6 }
 0x159   : > { %v382_v2 = vsub.f32 1.0, %v381_v1 }
 0x15b   : > { %v383_v5 = vmul.f32 %v621_v63, %v382_v2 }
 0x15d   : > { %v384_v7 = vadd.f32 %v621_v63, %v383_v5 }
 0x15f   : > { %v388_v10 = vsel %vm387_vm8, %v621_v63, %v384_v7 }
 0x160   : > { %v393_v11 = vsel %vm390_vm9, %v392_v8, %v388_v10 }
 0x161   : > { %v394_v12 = vmul.f32 %v393_v11, %v369_v9 }
 0x163   : > { %v544_v13 = vclamps-f32 %v394_v12, 1.0 }
 0x165   : > { %v397_v14 = vadd.f32 1.0, %v544_v13 }
 0x167   : > { %v398_v15 = vmul.f32 0.5, %v397_v14 }
 0x169   : > { %v399_v16 = vmul.f32 %v398_v15, %v355_v41 }
 0x16b   : > { %v400_v17 = vpack.c.bf16 %v399_v16, %v399_v16 }
 0x16d   : > { %561 = vmatmul.msk.bf16.vlgmr.msra.gmra.mxu1 %vm314_vm1, %v400_v17 }
 0x1ea   : > { %v449_v19 = vpop.f32.mrf.mxu1 }
 0x1eb   : > { %v450_v20 = vadd.f32 %v615_v18, %v449_v19 }
 0x1ed   : > { %453 = vst [vmem:[%s269_s16] sm:$0xff] %v450_v20 }
 0x1ee   : > { %649 = shalt.err (!%p646_p3)
}
 0x1ef   : > { %572 = dma.vmem_to_hbm [thread:$0]  (%p765_p5), %s468_s17, 128, %s470_s18, %s455_s19  }
 0x1f2   : > { %v451_v21 = vpop.f32.mrf.mxu1 }
 0x1f3 PF: > { %p578_p4 = scmp.ge.s32.totalorder %s684_s27, 2  ;;  %s481_s22 = sand.u32 1, %s672_s24  }
 0x1f4   : > { %s482_s13 = scalar_lea.sflag [#allocation3], %s481_s22 }
 0x1f5   : > { %p575_p7 = pnand %p578_p4, %p769_p6 }
 0x1f7   : > { %p576_p8 = pneg %p575_p7 }
 0x1f9   : > { %667 = dma.done.wait (%p576_p8), %s482_s13, 128  }
 0x1fa   : > { %669 = vsyncadd (%p576_p8), %s482_s13, 4294967168  ;;  %p17_p9 = scmp.ge.s32.totalorder %s752_s30, 4   ;;  %s855_s24 = smov %s676_s25 }
 0x1fb   : > { %s856_s25 = smov %s680_s26  ;;  %s857_s26 = smov %s763_s10 }
 0x1fc   : > { %s858_s27 = smov %s752_s30  ;;  %19 = sbr.rel (!%p17_p9) target bundleno = 3 (0x3), region = 83 }
 0x201   :  { %488 = vsyncpa [#allocation3], 1 }
 0x202   :  { %490 = vsyncpa [#allocation3 + $0x1], 1 }

</bundles_post_ra>
